<compile_context>
chip_gen: v5e
topology: v5e:2x2
jax: 0.10.0
libtpu: 0.0.40
codegen_flags: <defaults>
</compile_context>

<pallas_src>
import functools
import math

import jax
import jax.numpy as jnp
from jax.experimental import pallas as pl
from jax.experimental.pallas import tpu as pltpu


def make_positional_encoding_table(embed_dim: int, max_seq_len: int = 512,
                                   dtype=jnp.float32) -> jnp.ndarray:
    """[max_seq_len, embed_dim] table identical to the PyTorch __init__ loops."""
    pos = jnp.arange(max_seq_len, dtype=jnp.float32)[:, None]             # [L, 1]
    j = jnp.arange(embed_dim, dtype=jnp.float32)[None, :]                 # [1, D]
    angles = pos * jnp.power(jnp.float32(10000.0), -2.0 * j / embed_dim)  # [L, D]
    even = (jnp.arange(embed_dim) % 2 == 0)[None, :]
    return jnp.where(even, jnp.sin(angles), jnp.cos(angles)).astype(dtype)


def _scale_add_pe_kernel(x_ref, pe_ref, o_ref, *, scale: float):
    """One grid step: [tile_s, D] slice of one batch element plus matching pe rows."""
    x = x_ref[...]                                                        # [tile_s, D]
    o_ref[...] = (x * jnp.asarray(scale, x.dtype) + pe_ref[...]).astype(o_ref.dtype)


def _round_up(n: int, m: int) -> int:
    return -(-n // m) * m


def _vmem_budget_bytes() -> tuple[int, int]:
    """(vmem_limit_bytes, per-call tile budget) derived from the actual chip."""
    try:
        cap = int(pltpu.get_tpu_info().vmem_capacity_bytes)
    except Exception:
        cap = 64 * 1024 * 1024            # conservative (v7x) fallback
    vmem_limit = min(cap // 2, 64 * 1024 * 1024)
    budget = max(2 * 1024 * 1024, vmem_limit // 2)
    return vmem_limit, budget


def _pick_seq_tile(S: int, D: int, itemsize: int, budget: int) -> int:
    """Largest seq-row tile whose real VMEM footprint fits the budget.

    Footprint counts: lane padding of D to a multiple of 128, sublane packing
    of rows (8 f32 / 16 bf16 / 32 int8), and 2-deep double-buffering of the
    x tile, the out tile and the pe tile (factor 6)."""
    pack = 8 * max(1, 4 // itemsize)
    d_pad = _round_up(D, 128)

    def footprint(ts: int) -> int:
        return 6 * _round_up(ts, pack) * d_pad * itemsize

    if footprint(S) <= budget:
        return S                           # whole seq in one block (full-dim block is legal)
    max_rows = (budget // (6 * d_pad * itemsize)) // pack * pack
    max_rows = max(pack, max_rows)
    # Prefer a tile that divides S cleanly; otherwise fall back to cdiv grid
    # with a masked partial last block (safe for a pure elementwise op).
    for ts in range(max_rows, pack - 1, -pack):
        if S % ts == 0:
            return ts
    return max_rows


def positional_encoder_forward(x: jnp.ndarray, pe: jnp.ndarray,
                               *, seq_tile: int | None = None) -> jnp.ndarray:
    """x: [batch, seq_len, embed_dim]; pe: [max_seq_len, embed_dim]."""
    B, S, D = x.shape
    scale = math.sqrt(D)

    # Slice + cast once per call; in a real module cache this at init keyed on (S, dtype).
    pe2 = pe[:S].astype(x.dtype)                                          # [S, D]

    vmem_limit, budget = _vmem_budget_bytes()
    itemsize = jnp.dtype(x.dtype).itemsize
    ts = _pick_seq_tile(S, D, itemsize, budget) if seq_tile is None else seq_tile
    ts = min(ts, S)

    # Batch is the innermost grid axis so pe's block index is constant across it
    # (Pallas elides the repeated pe DMA); on v7x both axes are "parallel" so the
    # grid (which has >= B steps) can be sharded across the two TensorCores.
    grid = (pl.cdiv(S, ts), B)

    out = pl.pallas_call(
        functools.partial(_scale_add_pe_kernel, scale=scale),
        out_shape=jax.ShapeDtypeStruct((B, S, D), x.dtype),
        grid=grid,
        in_specs=[
            # x tile: batch dim squeezed, seq rows on sublanes, embed on lanes.
            pl.BlockSpec((None, ts, D), lambda s, b: (b, s, 0)),
            # pe tile: broadcast over the squeezed batch dim.
            pl.BlockSpec((ts, D), lambda s, b: (s, 0)),
        ],
        out_specs=pl.BlockSpec((None, ts, D), lambda s, b: (b, s, 0)),
        compiler_params=pltpu.CompilerParams(
            dimension_semantics=("parallel", "parallel"),
            vmem_limit_bytes=vmem_limit,
        ),
        # NOTE: default 2-deep buffering is enough for properly sized tiles;
        # only consider pipeline_mode=pl.Buffered(3) if profiling shows exposed DMA.
    )(x, pe2)

    return out


if __name__ == "__main__":
    # Shapes consistent with the module: x is [batch, seq_len, embed_dim].
    BATCH, SEQ, EMBED, MAX_LEN = 2, 8, 32, 512

    key = jax.random.PRNGKey(0)
    x = jax.random.normal(key, (BATCH, SEQ, EMBED), dtype=jnp.float32)
    pe = make_positional_encoding_table(EMBED, MAX_LEN)

    out = jax.block_until_ready(positional_encoder_forward(x, pe))
    ref = x * math.sqrt(EMBED) + pe[:SEQ][None, :, :]
    assert out.shape == (BATCH, SEQ, EMBED)
    assert jnp.allclose(out, ref, atol=1e-5, rtol=1e-5)

    # Second shape: full sublane occupancy and a multi-step grid over batch.
    B2, S2, D2 = 8, 16, 64
    x_b = jax.random.normal(jax.random.PRNGKey(1), (B2, S2, D2), dtype=jnp.float32)
    pe_b = make_positional_encoding_table(D2, MAX_LEN)
    out_b = jax.block_until_ready(positional_encoder_forward(x_b, pe_b))
    ref_b = x_b * math.sqrt(D2) + pe_b[:S2][None, :, :]
    assert jnp.allclose(out_b, ref_b, atol=1e-5, rtol=1e-5)

    print("KERNEL_OK")
</pallas_src>

<mosaic_0001>
module attributes {stable_mosaic.version = 11 : i64} {
  func.func @_scale_add_pe_kernel(%arg0: i32, %arg1: i32, %arg2: memref<1x8x32xf32, #tpu.memory_space<vmem>>, %arg3: memref<8x32xf32, #tpu.memory_space<vmem>>, %arg4: memref<1x8x32xf32, #tpu.memory_space<vmem>>) attributes {dimension_semantics = [#tpu.dimension_semantics<parallel>, #tpu.dimension_semantics<parallel>], iteration_bounds = array<i64: 1, 2>, scalar_prefetch = 0 : i64, scratch_operands = 0 : i64, tpu.core_type = #tpu.core_type<tc>, window_params = [{transform_indices = @transform_0, window_bounds = array<i64: 1, 8, 32>}, {transform_indices = @transform_1, window_bounds = array<i64: 8, 32>}, {transform_indices = @transform_2, window_bounds = array<i64: 1, 8, 32>}]} {
    %c0 = arith.constant 0 : index
    %c0_0 = arith.constant 0 : index
    %c0_1 = arith.constant 0 : index
    %0 = vector.load %arg2[%c0, %c0_0, %c0_1] : memref<1x8x32xf32, #tpu.memory_space<vmem>>, vector<1x8x32xf32>
    %1 = vector.shape_cast %0 : vector<1x8x32xf32> to vector<8x32xf32>
    %cst = arith.constant 5.65685415 : f32
    %2 = vector.broadcast %cst : f32 to vector<8x32xf32>
    %3 = arith.mulf %1, %2 : vector<8x32xf32>
    %c0_2 = arith.constant 0 : index
    %c0_3 = arith.constant 0 : index
    %4 = vector.load %arg3[%c0_2, %c0_3] : memref<8x32xf32, #tpu.memory_space<vmem>>, vector<8x32xf32>
    %5 = arith.addf %3, %4 : vector<8x32xf32>
    %c0_4 = arith.constant 0 : index
    %c0_5 = arith.constant 0 : index
    %c0_6 = arith.constant 0 : index
    %6 = vector.load %arg4[%c0_4, %c0_5, %c0_6] : memref<1x8x32xf32, #tpu.memory_space<vmem>>, vector<1x8x32xf32>
    %7 = vector.shape_cast %6 : vector<1x8x32xf32> to vector<8x32xf32>
    %8 = vector.shape_cast %5 : vector<8x32xf32> to vector<1x8x32xf32>
    tpu.vector_store %arg4[%c0_4, %c0_5, %c0_6], %8 {strides = array<i32>} : memref<1x8x32xf32, #tpu.memory_space<vmem>>, vector<1x8x32xf32>,
    return
  }
  func.func @transform_0(%arg0: i32, %arg1: i32) -> (i32, i32, i32) {
    %c0_i32 = arith.constant 0 : i32
    %c0_i32_0 = arith.constant 0 : i32
    return %arg1, %arg0, %c0_i32 : i32, i32, i32
  }
  func.func @transform_1(%arg0: i32, %arg1: i32) -> (i32, i32) {
    %c0_i32 = arith.constant 0 : i32
    %c0_i32_0 = arith.constant 0 : i32
    return %arg0, %c0_i32 : i32, i32
  }
  func.func @transform_2(%arg0: i32, %arg1: i32) -> (i32, i32, i32) {
    %c0_i32 = arith.constant 0 : i32
    %c0_i32_0 = arith.constant 0 : i32
    return %arg1, %arg0, %c0_i32 : i32, i32, i32
  }
}

</mosaic_0001>

<bundles_post_ra>
// kernel: tpu_custom_call.1
= control target key start
LH: loop header
LB: loop body
LE: loop exit
PB: predicated region body
PF: predicated region fallthrough
CT: control target
= control target key end

     0   :  { %7 = vsyncpa [#allocation3], 0  ;;  %s716_s0 = inlined_call_operand.hbm [shape: f32[2,8,32], index: 0, kind: input, shape index: {}]   ;;  %s717_s1 = inlined_call_operand.hbm [shape: f32[8,32], index: 1, kind: input, shape index: {}]   ;;  %s718_s2 = inlined_call_operand.hbm [shape: f32[2,8,32], index: 2, kind: output, shape index: {}]  }
   0x1   :  { %9 = vsyncpa [#allocation3 + $0x1], 0 }
   0x2   :  { %10 = vsyncpa [#allocation6], 0 }
   0x3   :  { %11 = vsyncpa [#allocation4], 0 }
   0x4   :  { %13 = vsyncpa [#allocation4 + $0x1], 0  ;;  %s567_s9 = smov 0   ;;  %s569_s10 = smov 0  }
   0x5   :  { %s571_s11 = smov 0   ;;  %s573_s12 = smov 0  }
   0x6   :  { %s575_s13 = smov 0   ;;  %s577_s14 = smov 0  }
   0x7 LB: > { %s315_s15 = sadd.s32 4294967295, %s549_s14   ;;  %s316_s16 = sadd.s32 4294967294, %s549_s14   ;;  %s549_s14 = sphi %s577_s14, %s19_s14   ;;  %s545_s13 = sphi %s575_s13, %s730_s13   ;;  %s541_s12 = sphi %s573_s12, %s729_s12   ;;  %s537_s11 = sphi %s571_s11, %s728_s11   ;;  %s533_s10 = sphi %s569_s10, %s727_s10   ;;  %s529_s9 = sphi %s567_s9, %s726_s9  }
   0x8   : > { %p53_p0 = scmp.ne.s32.totalorder %s533_s10, %s529_s9  ;;  %p601_p1 = scmp.eq.s32.totalorder %s315_s15, 0 }
   0x9   : > { %p605_p2 = scmp.eq.s32.totalorder %s315_s15, 1  ;;  %p111_p3 = scmp.eq.s32.totalorder %s316_s16, 1 }
   0xa   : > { %p611_p4 = por %p601_p1, %p53_p0  ;;  %p317_p5 = scmp.ge.s32.totalorder %s549_s14, 1 }
   0xb   : > { %p616_p6 = por %p111_p3, %p53_p0  ;;  %p118_p7 = scmp.lt.s32.totalorder %s549_s14, 3 }
   0xc   : > { %s132_s23 = sshll.u32 %s717_s1, 4  ;;  %p319_p9 = scmp.ge.s32.totalorder %s549_s14, 2  ;;  %s133_s23 = int_to_ptr.hbm [resolvable:$true] %s132_s23 }
   0xd   : > { %p624_p8 = pnand %p317_p5, %p118_p7  ;;  %s551_s25 = smov [#allocation5]  }
   0xe   : > { %s134_s26 = sshll.u32 %s551_s25, 4  ;;  %s28_s27 = sadd.s32 1, %s545_s13  ;;  %s135_s26 = int_to_ptr.vmem [resolvable:$true] %s134_s26 }
   0xf   : > { %p338_p10 = pneg %p624_p8  ;;  %p29_p12 = scmp.ge.s32.totalorder %s28_s27, 2 }
  0x10   : > { %s40_s28 = sadd.s32 1, %s537_s11  ;;  %p47_p13 = scmp.ne.s32.totalorder %s537_s11, %s533_s10 }
  0x11   : > { %p339_p11 = pnand %p338_p10, %p601_p1  ;;  %p48_p0 = scmp.eq.s32.totalorder %s549_s14, 0 }
  0x12   : > { %s732_s27 = smov (%p29_p12, %s28_s27), 0  ;;  %p646_p5 = por %p605_p2, %p47_p13 }
  0x13   : > { %341 = dma.hbm_to_vmem [thread:$0]  (!%p339_p11), %s133_s23, 128, %s135_s26, [#allocation6]  }
  0x14   : > { %p640_p3 = por %p48_p0, %p47_p13  ;;  %s35_s3 = ssub.s32 %s545_s13, %s732_s27 }
  0x15   : > { %p351_p7 = scmp.lt.s32.totalorder %s549_s14, 2  ;;  %p38_p10 = scmp.eq.s32.totalorder %s35_s3, 0 }
  0x16   : > { %s145_s4 = sand.u32 1, %s537_s11   ;;  %s321_s7 = sshll.u32 %s545_s13, 3 }
  0x17   : > { %s320_s5 = sshll.u32 %s145_s4, 3  ;;  %s154_s16 = scalar_lea.hbm %s716_s0, %s321_s7 }
  0x18   : > { %s655_s6 = scalar_select %p38_p10, %s537_s11, %s40_s28  }
  0x19   : > { %s149_s21 = scalar_lea.vmem [#allocation2], %s320_s5  ;;  %s156_s18 = sshll.u32 %s154_s16, 4  ;;  %s157_s18 = int_to_ptr.hbm [resolvable:$true] %s156_s18 }
  0x1a   : > { %s158_s22 = sshll.u32 %s149_s21, 4  ;;  %p343_p2 = pnand %p351_p7, %p640_p3  ;;  %s159_s22 = int_to_ptr.vmem [resolvable:$true] %s158_s22 }
  0x1b   : > { %s146_s23 = scalar_lea.sflag [#allocation3], %s145_s4  ;;  %167 = sbr.rel (%p624_p8) target bundleno = 50 (0x32), region = 28 }
  0x1c   : > { %345 = dma.hbm_to_vmem [thread:$0]  (!%p343_p2), %s157_s18, 128, %s159_s22, %s146_s23  }
  0x1d   : > { %s666_s25 = sand.u32 (!%p624_p8), 1, %s533_s10  }
  0x1e   : > { %s323_s26 = sshll.u32 (!%p624_p8), %s666_s25, 3  ;;  %s170_s28 = scalar_lea.sflag (!%p624_p8), [#allocation3], %s666_s25 }
  0x1f   : > { %s173_s3 = scalar_lea.vmem (!%p624_p8), [#allocation2], %s323_s26 }
  0x20   : > { %516 = dma.done.wait (%p611_p4), %s170_s28, 128  }
  0x21   : > { %518 = vsyncadd (%p611_p4), %s170_s28, 4294967168 }
  0x22   : > { %520 = dma.done.wait (%p601_p1), [#allocation6], 128  }
  0x23   : > { %522 = vsyncadd (%p601_p1), [#allocation6], 4294967168  ;;  %s327_s24 = sshll.u32 %s541_s12, 3  ;;  %v200_v0 = vld [vmem:[%s173_s3] sm:$0xff]  ;;  %v202_v1 = vld [vmem:[#allocation5] sm:$0xff]  ;;  %s199_s7 = scalar_lea.vmem [#allocation7], %s323_s26 }
  0x24   : > { %s218_s5 = scalar_lea.hbm %s718_s2, %s327_s24  ;;  %s220_s8 = sshll.u32 %s199_s7, 4  ;;  %v201_v2 = vmul.f32 5.656854, %v200_v0  ;;  %vm204_vm0 = vcmask 261120   ;;  %s221_s8 = int_to_ptr.vmem [resolvable:$true] %s220_s8 }
  0x25   : > { %s222_s19 = sshll.u32 %s218_s5, 4  ;;  %s207_s17 = scalar_lea.sflag [#allocation4], %s666_s25  ;;  %s223_s19 = int_to_ptr.hbm [resolvable:$true] %s222_s19 }
  0x26   : > { %v203_v3 = vadd.f32 %v202_v1, %v201_v2  ;;  %s477_s15 = sshra.s32 %s223_s19, 4  ;;  %s483_s22 = scalar_lea.hbm %s718_s2, 16  ;;  %s478_s15 = int_to_ptr.hbm [resolvable:$true] %s477_s15 }
  0x27   : > { %s479_s12 = scalar_lea.hbm %s478_s15, 8  ;;  %p484_p11 = scmp.lt.s32.totalorder %s478_s15, %s718_s2 }
  0x28   : > { %205 = vst.msk [vmem:[%s199_s7] sm:$0xff] %vm204_vm0, %v203_v3  ;;  %p480_p1 = scmp.ne.s32.totalorder %s478_s15, %s479_s12  ;;  %p485_p12 = scmp.lt.s32.totalorder %s483_s22, %s479_s12 }
  0x2a   : > { %p481_p4 = pnand %p480_p1, %p646_p5  ;;  %p486_p13 = por %p485_p12, %p484_p11 }
  0x2c   : > { %p482_p8 = pneg %p481_p4 }
  0x2e   : > { %p487_p0 = pnand %p486_p13, %p482_p8 }
  0x30   : > { %490 = shalt.err (!%p487_p0)
}
  0x31   : > { %336 = dma.vmem_to_hbm [thread:$0]  (%p646_p5), %s221_s8, 128, %s223_s19, %s207_s17  }
  0x32 PF: > { %s234_s25 = sand.u32 1, %s529_s9   ;;  %p347_p3 = pnand %p319_p9, %p616_p6 }
  0x33   : > { %s235_s26 = scalar_lea.sflag [#allocation4], %s234_s25 }
  0x34   : > { %p348_p7 = pneg %p347_p3 }
  0x36   : > { %524 = dma.done.wait (%p348_p7), %s235_s26, 128  }
  0x37   : > { %526 = vsyncadd (%p348_p7), %s235_s26, 4294967168  ;;  %s19_s14 = sadd.s32 1, %s549_s14   ;;  %s726_s9 = smov %s533_s10 }
  0x38   : > { %p16_p10 = scmp.ge.s32.totalorder %s19_s14, 4   ;;  %s727_s10 = smov %s537_s11 }
  0x39   : > { %s728_s11 = smov %s655_s6  ;;  %s729_s12 = smov %s545_s13 }
  0x3a   : > { %s730_s13 = smov %s732_s27  ;;  %18 = sbr.rel (!%p16_p10) target bundleno = 7 (0x7), region = 78 }
  0x3f   :  { %241 = vsyncpa [#allocation3], 1 }
  0x40   :  { %243 = vsyncpa [#allocation3 + $0x1], 1 }
  0x41   :  { %244 = vsyncpa [#allocation6], 1 }
  0x42   :  { %245 = vsyncpa [#allocation4], 1 }
  0x43   :  { %247 = vsyncpa [#allocation4 + $0x1], 1 }

</bundles_post_ra>
